<compile_context>
chip_gen: v5e
topology: v5e:2x2
jax: 0.10.0
libtpu: 0.0.40
codegen_flags: <defaults>
</compile_context>

<pallas_src>
import functools

import jax
import jax.numpy as jnp
from jax import lax
from jax.experimental import pallas as pl
from jax.experimental.pallas import tpu as pltpu


def _round_up(x, m):
    return (x + m - 1) // m * m


# ----------------------------------------------------------------------------- kernel


def _fused_mlp_kernel(x_ref, *refs, n_layers, transpose_out, final_relu):
    """Run the whole MLP on one (tm, D) tile of rows; activations never leave VMEM/vregs."""
    o_ref = refs[-1]
    wb = refs[:-1]                                    # (w0, b0, w1, b1, ...)
    h = x_ref[...].astype(jnp.bfloat16)               # in-kernel cast: f32 tile -> bf16 MXU operand
    for layer in range(n_layers):
        w_ref, b_ref = wb[2 * layer], wb[2 * layer + 1]
        is_last = layer == n_layers - 1
        if is_last and transpose_out:
            # Lane-dense final store for narrow widths:
            #   out[n, m] = sum_k wT[n, k] * h[m, k] + b[n]
            # Contraction over the LAST dim of both operands (MXU "NT" form) -> no XLU
            # transpose of the big (tm, K) activation tile; only the tiny weight was
            # pre-transposed once in the wrapper.
            red = lax.dot_general(
                w_ref[...], h,                         # (N, K) bf16 , (tm, K) bf16
                dimension_numbers=(((1,), (1,)), ((), ())),
                preferred_element_type=jnp.float32)    # -> (N, tm) f32
            out = red + b_ref[...]                     # (N, 1) f32 bias, broadcast over lanes
            if final_relu:                             # only when output_layer=False
                out = jnp.maximum(out, 0.0)
            o_ref[...] = out.reshape(o_ref.shape).astype(o_ref.dtype)
            return
        acc = jnp.dot(h, w_ref[...], preferred_element_type=jnp.float32)  # (tm, N) f32
        acc = acc + b_ref[...]                         # (1, N) f32 bias, broadcast over rows
        if (not is_last) or final_relu:
            acc = jnp.maximum(acc, 0.0)                # ReLU in f32 (no bf16 VPU on v5e)
        if is_last:
            o_ref[...] = acc.astype(o_ref.dtype)       # direct lane-dense store (N % 128 == 0)
        else:
            h = acc.astype(jnp.bfloat16)               # back to bf16 for the next MXU pass


# -------------------------------------------------------------------- sizing heuristics


def _vmem_limit_bytes():
    """Generation-gated scoped-VMEM limit (96 MiB on 128-MiB chips, 32 MiB on v7x/unknown)."""
    phys = 64 * 2**20                                  # assume the tightest chip (v7x) if unknown
    try:
        info = pltpu.get_tpu_info()
        for name in ("vmem_capacity_bytes", "vmem_size_bytes", "vmem_bytes"):
            v = getattr(info, name, None)
            if v:
                phys = int(v)
                break
    except Exception:
        pass
    if phys >= 100 * 2**20:                            # v5e / v6e: 128 MiB physical
        return 96 * 2**20
    return 32 * 2**20                                  # v7x: 64 MiB physical -> stay tight


def _tm_cap_from_vmem(input_dim, layer_dims, vmem_limit):
    """Largest row tile whose working set fits comfortably inside the scoped VMEM limit."""
    widest = max([input_dim] + list(layer_dims))
    out_dim = layer_dims[-1]
    per_row = (
        input_dim * 4 * 2          # f32 x tile, double-buffered by the pipeline
        + widest * (4 + 2)         # widest f32 accumulator + bf16 recast intermediate
        + out_dim * 4 * 2          # output block, double-buffered (upper bound)
    )
    fixed = 0                      # weights + biases (double-buffered, constant index_map)
    prev = input_dim
    for n in layer_dims:
        fixed += (prev * n * 2 + n * 4) * 2
        prev = n
    budget = int(vmem_limit * 0.6) - fixed
    cap = budget // per_row if per_row > 0 else 4096
    cap = (cap // 128) * 128
    return int(max(256, min(4096, cap)))


def _choose_tm(M, tm_cap):
    """Row tile: exact single tile for small M, else >=2 balanced lane-dense tiles."""
    if M <= 256:
        return M                                       # block == full dim, no ragged edge
    nt = max(2, pl.cdiv(M, tm_cap))                    # >=2 tiles so both v7x TCs get work
    return min(tm_cap, _round_up(pl.cdiv(M, nt), 128))


# --------------------------------------------------------------------------- wrapper


def init_mlp_params(key, input_dim, embed_dims, output_layer=True):
    """torch.nn.Linear default init: U(-1/sqrt(fan_in), +1/sqrt(fan_in)). f32 master weights."""
    params = []
    in_dim = input_dim
    dims = list(embed_dims) + ([1] if output_layer else [])
    for out_dim in dims:
        key, kw, kb = jax.random.split(key, 3)
        bound = float(in_dim) ** -0.5
        w = jax.random.uniform(kw, (in_dim, out_dim), jnp.float32, -bound, bound)
        b = jax.random.uniform(kb, (out_dim,), jnp.float32, -bound, bound)
        params.append((w, b))
        in_dim = out_dim
    return params


def mlp_forward(x, params, output_layer=True, out_dtype=jnp.float32):
    """x: (batch, num_fields, input_dim) f32 -> (batch, num_fields, out_dim) `out_dtype`.

    Set out_dtype=jnp.bfloat16 to halve output HBM writeback (accumulation is f32 either way).
    """
    B, F, D = x.shape
    M = B * F
    n_layers = len(params)
    layer_dims = [w.shape[1] for (w, _) in params]
    out_dim = layer_dims[-1]
    final_relu = not output_layer                      # with an output layer, last Linear has no ReLU
    transpose_out = (out_dim % 128) != 0               # lane-dense transposed slab for narrow widths

    vmem_limit = _vmem_limit_bytes()
    tm_cap = _tm_cap_from_vmem(D, layer_dims, vmem_limit)
    tm = _choose_tm(M, tm_cap)
    num_tiles = pl.cdiv(M, tm)

    # Free metadata reshape; x stays f32 in HBM (single read pass), cast happens in-kernel.
    x2 = x.reshape(M, D)

    operands = [x2]
    in_specs = [pl.BlockSpec((tm, D), lambda i: (i, 0))]
    flops = 0
    weight_bytes = 0
    for layer, (w, b) in enumerate(params):
        K, N = w.shape
        flops += 2 * num_tiles * tm * K * N
        if transpose_out and layer == n_layers - 1:
            w_op = jnp.asarray(w).T.astype(jnp.bfloat16)               # (N, K) for the NT matmul
            b_op = jnp.asarray(b).reshape(N, 1).astype(jnp.float32)    # (N, 1) column bias
            in_specs.append(pl.BlockSpec((N, K), lambda i: (0, 0)))
            in_specs.append(pl.BlockSpec((N, 1), lambda i: (0, 0)))
        else:
            w_op = jnp.asarray(w).astype(jnp.bfloat16)                 # (K, N)
            b_op = jnp.asarray(b).reshape(1, N).astype(jnp.float32)    # (1, N) row bias
            in_specs.append(pl.BlockSpec((K, N), lambda i: (0, 0)))
            in_specs.append(pl.BlockSpec((1, N), lambda i: (0, 0)))
        operands += [w_op, b_op]
        weight_bytes += w_op.size * 2 + b_op.size * 4

    out_itemsize = jnp.dtype(out_dtype).itemsize
    if transpose_out:
        # (num_tiles, out_dim, tm) slab: last dim tm is lane-dense; un-transposed in wrapper.
        out_shape = jax.ShapeDtypeStruct((num_tiles, out_dim, tm), out_dtype)
        out_specs = pl.BlockSpec((1, out_dim, tm), lambda i: (i, 0, 0))
        out_bytes = num_tiles * out_dim * tm * out_itemsize
    else:
        # out_dim is a multiple of 128 -> direct store is already lane-dense; ragged last
        # tile's writeback is masked by Pallas, so no padded slab is needed.
        out_shape = jax.ShapeDtypeStruct((M, out_dim), out_dtype)
        out_specs = pl.BlockSpec((tm, out_dim), lambda i: (i, 0))
        out_bytes = M * out_dim * out_itemsize

    kernel = functools.partial(
        _fused_mlp_kernel, n_layers=n_layers,
        transpose_out=transpose_out, final_relu=final_relu)

    cost = pl.CostEstimate(
        flops=flops, transcendentals=0,
        bytes_accessed=M * D * 4 + weight_bytes + out_bytes)

    out = pl.pallas_call(
        kernel,
        out_shape=out_shape,
        grid_spec=pltpu.PrefetchScalarGridSpec(
            num_scalar_prefetch=0,
            grid=(num_tiles,),
            in_specs=in_specs,
            out_specs=out_specs,
        ),
        compiler_params=pltpu.CompilerParams(
            dimension_semantics=("parallel",),         # shard row tiles across TCs on v7x
            vmem_limit_bytes=vmem_limit,
        ),
        cost_estimate=cost,
    )(*operands)

    if transpose_out:
        res = jnp.swapaxes(out, 1, 2).reshape(num_tiles * tm, out_dim)[:M]
    else:
        res = out
    return res.reshape(B, F, out_dim)


# -------------------------------------------------------------------------- reference


def _reference(x, params, output_layer=True):
    """Pure-JAX reference with the same bf16-operand / f32-accumulate discipline."""
    B, F, D = x.shape
    h = x.reshape(B * F, D).astype(jnp.bfloat16)
    n = len(params)
    out = None
    for i, (w, b) in enumerate(params):
        acc = jnp.dot(h, w.astype(jnp.bfloat16),
                      preferred_element_type=jnp.float32) + b.reshape(1, -1)
        is_last = i == n - 1
        if (not is_last) or (not output_layer):
            acc = jnp.maximum(acc, 0.0)
        if is_last:
            out = acc
        else:
            h = acc.astype(jnp.bfloat16)
    return out.reshape(B, F, -1).astype(jnp.float32)


if __name__ == "__main__":
    key = jax.random.PRNGKey(0)
    k1, k2, k3, k4, k5, k6 = jax.random.split(key, 6)

    # Test 1: canonical config — final Linear->1, lane-dense transposed store.
    B, F, D = 2, 4, 16
    x = jax.random.normal(k1, (B, F, D), jnp.float32)
    params = init_mlp_params(k2, D, (32, 32), output_layer=True)
    out = jax.block_until_ready(mlp_forward(x, params, output_layer=True))
    ref = _reference(x, params, output_layer=True)
    assert out.shape == (B, F, 1), out.shape
    assert jnp.allclose(out, ref, atol=2e-2, rtol=2e-2), float(jnp.max(jnp.abs(out - ref)))

    # Test 2: no output layer, narrow final width (48 < 128) -> transposed store + final ReLU.
    B2, F2, D2 = 3, 5, 16
    x2 = jax.random.normal(k3, (B2, F2, D2), jnp.float32)
    params2 = init_mlp_params(k4, D2, (32, 48), output_layer=False)
    out2 = jax.block_until_ready(mlp_forward(x2, params2, output_layer=False))
    ref2 = _reference(x2, params2, output_layer=False)
    assert out2.shape == (B2, F2, 48), out2.shape
    assert jnp.allclose(out2, ref2, atol=2e-2, rtol=2e-2), float(jnp.max(jnp.abs(out2 - ref2)))

    # Test 3: multi-tile grid with a ragged last tile + 128-wide direct (lane-dense) store.
    B3, F3, D3 = 9, 31, 16                             # M = 279 -> 2 tiles of 256 rows, last ragged
    x3 = jax.random.normal(k5, (B3, F3, D3), jnp.float32)
    params3 = init_mlp_params(k6, D3, (64, 128), output_layer=False)
    out3 = jax.block_until_ready(mlp_forward(x3, params3, output_layer=False))
    ref3 = _reference(x3, params3, output_layer=False)
    assert out3.shape == (B3, F3, 128), out3.shape
    assert jnp.allclose(out3, ref3, atol=2e-2, rtol=2e-2), float(jnp.max(jnp.abs(out3 - ref3)))

    print("KERNEL_OK")
</pallas_src>

<mosaic_0001>
module attributes {stable_mosaic.version = 11 : i64} {
  func.func @_fused_mlp_kernel(%arg0: i32, %arg1: memref<8x16xf32, #tpu.memory_space<vmem>>, %arg2: memref<16x32xbf16, #tpu.memory_space<vmem>>, %arg3: memref<1x32xf32, #tpu.memory_space<vmem>>, %arg4: memref<32x32xbf16, #tpu.memory_space<vmem>>, %arg5: memref<1x32xf32, #tpu.memory_space<vmem>>, %arg6: memref<1x32xbf16, #tpu.memory_space<vmem>>, %arg7: memref<1x1xf32, #tpu.memory_space<vmem>>, %arg8: memref<1x1x8xf32, #tpu.memory_space<vmem>>) attributes {dimension_semantics = [#tpu.dimension_semantics<parallel>], iteration_bounds = array<i64: 1>, scalar_prefetch = 0 : i64, scratch_operands = 0 : i64, tpu.core_type = #tpu.core_type<tc>, window_params = [{transform_indices = @transform_0, window_bounds = array<i64: 8, 16>}, {pipeline_mode = #tpu.pipeline_mode<synchronous>, transform_indices = @transform_1, window_bounds = array<i64: 16, 32>}, {pipeline_mode = #tpu.pipeline_mode<synchronous>, transform_indices = @transform_2, window_bounds = array<i64: 1, 32>}, {pipeline_mode = #tpu.pipeline_mode<synchronous>, transform_indices = @transform_3, window_bounds = array<i64: 32, 32>}, {pipeline_mode = #tpu.pipeline_mode<synchronous>, transform_indices = @transform_4, window_bounds = array<i64: 1, 32>}, {pipeline_mode = #tpu.pipeline_mode<synchronous>, transform_indices = @transform_5, window_bounds = array<i64: 1, 32>}, {pipeline_mode = #tpu.pipeline_mode<synchronous>, transform_indices = @transform_6, window_bounds = array<i64: 1, 1>}, {transform_indices = @transform_7, window_bounds = array<i64: 1, 1, 8>}]} {
    %c0 = arith.constant 0 : index
    %c0_0 = arith.constant 0 : index
    %0 = vector.load %arg1[%c0, %c0_0] : memref<8x16xf32, #tpu.memory_space<vmem>>, vector<8x16xf32>
    %1 = arith.truncf %0 : vector<8x16xf32> to vector<8x16xbf16>
    %c0_1 = arith.constant 0 : index
    %c0_2 = arith.constant 0 : index
    %2 = vector.load %arg2[%c0_1, %c0_2] : memref<16x32xbf16, #tpu.memory_space<vmem>>, vector<16x32xbf16>
    %cst = arith.constant dense<0.000000e+00> : vector<8x32xf32>
    %3 = tpu.matmul %1, %2, %cst {dimension_numbers = #tpu.dot_dimension_numbers<[1], [0], [0], [1], [0, 0, 1, 1], [], []>} : vector<8x16xbf16>, vector<16x32xbf16>, vector<8x32xf32> -> vector<8x32xf32>
    %c0_3 = arith.constant 0 : index
    %c0_4 = arith.constant 0 : index
    %4 = vector.load %arg3[%c0_3, %c0_4] : memref<1x32xf32, #tpu.memory_space<vmem>>, vector<1x32xf32>
    %5 = vector.broadcast %4 : vector<1x32xf32> to vector<8x32xf32>
    %6 = arith.addf %3, %5 : vector<8x32xf32>
    %cst_5 = arith.constant 0.000000e+00 : f32
    %7 = vector.broadcast %cst_5 : f32 to vector<8x32xf32>
    %8 = arith.maximumf %6, %7 : vector<8x32xf32>
    %9 = arith.truncf %8 : vector<8x32xf32> to vector<8x32xbf16>
    %c0_6 = arith.constant 0 : index
    %c0_7 = arith.constant 0 : index
    %10 = vector.load %arg4[%c0_6, %c0_7] : memref<32x32xbf16, #tpu.memory_space<vmem>>, vector<32x32xbf16>
    %cst_8 = arith.constant dense<0.000000e+00> : vector<8x32xf32>
    %11 = tpu.matmul %9, %10, %cst_8 {dimension_numbers = #tpu.dot_dimension_numbers<[1], [0], [0], [1], [0, 0, 1, 1], [], []>} : vector<8x32xbf16>, vector<32x32xbf16>, vector<8x32xf32> -> vector<8x32xf32>
    %c0_9 = arith.constant 0 : index
    %c0_10 = arith.constant 0 : index
    %12 = vector.load %arg5[%c0_9, %c0_10] : memref<1x32xf32, #tpu.memory_space<vmem>>, vector<1x32xf32>
    %13 = vector.broadcast %12 : vector<1x32xf32> to vector<8x32xf32>
    %14 = arith.addf %11, %13 : vector<8x32xf32>
    %cst_11 = arith.constant 0.000000e+00 : f32
    %15 = vector.broadcast %cst_11 : f32 to vector<8x32xf32>
    %16 = arith.maximumf %14, %15 : vector<8x32xf32>
    %17 = arith.truncf %16 : vector<8x32xf32> to vector<8x32xbf16>
    %c0_12 = arith.constant 0 : index
    %c0_13 = arith.constant 0 : index
    %18 = vector.load %arg6[%c0_12, %c0_13] : memref<1x32xbf16, #tpu.memory_space<vmem>>, vector<1x32xbf16>
    %cst_14 = arith.constant dense<0.000000e+00> : vector<1x8xf32>
    %19 = tpu.matmul %18, %17, %cst_14 {dimension_numbers = #tpu.dot_dimension_numbers<[1], [1], [0], [0], [0, 0, 1, 0], [], []>} : vector<1x32xbf16>, vector<8x32xbf16>, vector<1x8xf32> -> vector<1x8xf32>
    %c0_15 = arith.constant 0 : index
    %c0_16 = arith.constant 0 : index
    %20 = vector.load %arg7[%c0_15, %c0_16] : memref<1x1xf32, #tpu.memory_space<vmem>>, vector<1x1xf32>
    %21 = vector.broadcast %20 : vector<1x1xf32> to vector<1x8xf32>
    %22 = arith.addf %19, %21 : vector<1x8xf32>
    %23 = vector.shape_cast %22 : vector<1x8xf32> to vector<1x1x8xf32>
    %c0_17 = arith.constant 0 : index
    %c0_18 = arith.constant 0 : index
    %c0_19 = arith.constant 0 : index
    %24 = vector.load %arg8[%c0_17, %c0_18, %c0_19] : memref<1x1x8xf32, #tpu.memory_space<vmem>>, vector<1x1x8xf32>
    tpu.vector_store %arg8[%c0_17, %c0_18, %c0_19], %23 {strides = array<i32>} : memref<1x1x8xf32, #tpu.memory_space<vmem>>, vector<1x1x8xf32>,
    return
  }
  func.func @transform_0(%arg0: i32) -> (i32, i32) {
    %c0_i32 = arith.constant 0 : i32
    %c0_i32_0 = arith.constant 0 : i32
    return %arg0, %c0_i32 : i32, i32
  }
  func.func @transform_1(%arg0: i32) -> (i32, i32) {
    %c0_i32 = arith.constant 0 : i32
    %c0_i32_0 = arith.constant 0 : i32
    %c0_i32_1 = arith.constant 0 : i32
    return %c0_i32, %c0_i32_0 : i32, i32
  }
  func.func @transform_2(%arg0: i32) -> (i32, i32) {
    %c0_i32 = arith.constant 0 : i32
    %c0_i32_0 = arith.constant 0 : i32
    %c0_i32_1 = arith.constant 0 : i32
    return %c0_i32, %c0_i32_0 : i32, i32
  }
  func.func @transform_3(%arg0: i32) -> (i32, i32) {
    %c0_i32 = arith.constant 0 : i32
    %c0_i32_0 = arith.constant 0 : i32
    %c0_i32_1 = arith.constant 0 : i32
    return %c0_i32, %c0_i32_0 : i32, i32
  }
  func.func @transform_4(%arg0: i32) -> (i32, i32) {
    %c0_i32 = arith.constant 0 : i32
    %c0_i32_0 = arith.constant 0 : i32
    %c0_i32_1 = arith.constant 0 : i32
    return %c0_i32, %c0_i32_0 : i32, i32
  }
  func.func @transform_5(%arg0: i32) -> (i32, i32) {
    %c0_i32 = arith.constant 0 : i32
    %c0_i32_0 = arith.constant 0 : i32
    %c0_i32_1 = arith.constant 0 : i32
    return %c0_i32, %c0_i32_0 : i32, i32
  }
  func.func @transform_6(%arg0: i32) -> (i32, i32) {
    %c0_i32 = arith.constant 0 : i32
    %c0_i32_0 = arith.constant 0 : i32
    %c0_i32_1 = arith.constant 0 : i32
    return %c0_i32, %c0_i32_0 : i32, i32
  }
  func.func @transform_7(%arg0: i32) -> (i32, i32, i32) {
    %c0_i32 = arith.constant 0 : i32
    %c0_i32_0 = arith.constant 0 : i32
    %c0_i32_1 = arith.constant 0 : i32
    return %arg0, %c0_i32, %c0_i32_0 : i32, i32, i32
  }
}

</mosaic_0001>

<bundles_post_ra>
// kernel: tpu_custom_call.1
= control target key start
LH: loop header
LB: loop body
LE: loop exit
PB: predicated region body
PF: predicated region fallthrough
CT: control target
= control target key end

     0   :  { %s398_s0 = inlined_call_operand.hbm [shape: f32[8,16], index: 0, kind: input, shape index: {}]   ;;  %s399_s1 = inlined_call_operand.hbm [shape: bf16[16,32], index: 1, kind: input, shape index: {}]   ;;  %s400_s2 = inlined_call_operand.vmem [shape: f32[1,32], index: 2, kind: input, shape index: {}]   ;;  %s401_s3 = inlined_call_operand.hbm [shape: bf16[32,32], index: 3, kind: input, shape index: {}]   ;;  %s402_s4 = inlined_call_operand.vmem [shape: f32[1,32], index: 4, kind: input, shape index: {}]   ;;  %s403_s5 = inlined_call_operand.vmem [shape: bf16[1,32], index: 5, kind: input, shape index: {}]   ;;  %s404_s6 = inlined_call_operand.<no memory space> [shape: f32[1,1], index: 6, kind: input, shape index: {}]   ;;  %s405_s7 = inlined_call_operand.hbm [shape: f32[1,1,8], index: 7, kind: output, shape index: {}]  }
   0x1   :  { %v12_v0 = vstv %s404_s6 }
   0x2   :  { %13 = vst [vmem:[#allocation2] sm:$0x1] %v12_v0 }
   0x3   :  { %14 = vsyncpa [#allocation4], 0 }
   0x4   :  { %15 = vsyncpa [#allocation7], 0  ;;  %s32_s28 = sshll.u32 %s399_s1, 4  ;;  %s33_s28 = int_to_ptr.hbm [resolvable:$true] %s32_s28 }
   0x5   :  { %16 = vsyncpa [#allocation5], 0  ;;  %s324_s29 = smov [#allocation6]   ;;  %s22_s10 = sshll.u32 %s398_s0, 4  ;;  %s23_s10 = int_to_ptr.hbm [resolvable:$true] %s22_s10 }
   0x6   :  { %s34_s30 = sshll.u32 %s324_s29, 4  ;;  %s325_s11 = smov 64   ;;  %s35_s30 = int_to_ptr.vmem [resolvable:$true] %s34_s30 }
   0x7   :  { %s326_s12 = smov 4   ;;  %s327_s6 = smov [#allocation3]  }
   0x8   :  { %40 = dma.hbm_to_vmem [thread:$0]  %s33_s28, 128, %s35_s30, [#allocation7], %s325_s11, %s325_s11, %s326_s12  }
   0x9   :  { %s24_s13 = sshll.u32 %s327_s6, 4  ;;  %s47_s16 = sshll.u32 %s401_s3, 4  ;;  %s25_s13 = int_to_ptr.vmem [resolvable:$true] %s24_s13  ;;  %s48_s16 = int_to_ptr.hbm [resolvable:$true] %s47_s16 }
   0xa   :  { %27 = dma.hbm_to_vmem [thread:$0]  %s23_s10, 128, %s25_s13, [#allocation4]  }
   0xb   :  { %s328_s1 = smov [#allocation8]  }
   0xc   :  { %s49_s17 = sshll.u32 %s328_s1, 4  ;;  %s50_s17 = int_to_ptr.vmem [resolvable:$true] %s49_s17 }
   0xd   :  { %55 = dma.hbm_to_vmem [thread:$0]  %s48_s16, 256, %s50_s17, [#allocation7], %s325_s11, %s325_s11, %s326_s12  }
   0xe   :  { %318 = dma.done.wait [#allocation4], 128  }
   0xf   :  { %319 = vsyncadd [#allocation4], 4294967168 }
  0x10   :  { %320 = dma.done.wait [#allocation7], 384  }
  0x11   :  { %321 = vsyncadd [#allocation7], 4294966912  ;;  %v209_v1 = vld [vmem:[#allocation6] sm:$0xff]  ;;  %v75_v2 = vld [vmem:[#allocation3] sm:$0xff]  ;;  %vm89_vm0 = vcmask 130048   ;;  %vm128_vm1 = vcmask 261120  }
  0x12   :  { %v76_v3 = vpack.c.bf16 %v75_v2, %v75_v2  ;;  %100 = vmatpush.bf16.msra.mxu0 %v209_v1  ;;  %v211_v4 = vld [vmem:[#allocation8 + $0x8] sm:$0xff]  ;;  %v210_v5 = vld [vmem:[#allocation8] sm:$0xff]  ;;  %v329_v13 = vmov 0   ;;  %s330_s21 = smov [#allocation9]   ;;  %s183_s24 = sshll.u32 %s405_s7, 4  ;;  %vm174_vm2 = vcmask 57344   ;;  %s184_s24 = int_to_ptr.hbm [resolvable:$true] %s183_s24 }
  0x13   :  { %138 = vmatpush.bf16.msra.mxu1 %v211_v4  ;;  %v220_v6 = vld [vmem:[%s400_s2] ss:$0 sm:$0xff]  ;;  %219 = vset.pattern.permute.xlu0 %v329_v13  ;;  %s181_s22 = sshll.u32 %s330_s21, 4  ;;  %s182_s22 = int_to_ptr.vmem [resolvable:$true] %s181_s22 }
  0x14   :  { %v148_v12 = vld [vmem:[#allocation2] sm:$0x1] }
  0x15   :  { %198 = vmatmul.msk.bf16.vlgmr.msra.gmra.mxu0 %vm89_vm0, %v76_v3  ;;  %151 = vperm.xlu0 %219, %v148_v12   ;;  %v221_v14 = vld [vmem:[%s402_s4] ss:$0 sm:$0xff] }
  0x16   :  { %v147_v21 = vld [vmem:[%s403_s5] sm:$0x1] }
  0x17   :  { %139 = vmatpush.bf16.msra.mxu1 %v210_v5 }
  0x87   :  { %v152_v22 = vpop.permute.xlu0 %151 }
  0x88   :  { %v154_v23 = vperm.slane %v152_v22, 0 }
  0x92   :  { %v102_v7 = vpop.f32.mrf.mxu0 }
  0x93   :  { %v103_v8 = vadd.f32 %v220_v6, %v102_v7 }
  0x95   :  { %v106_v9 = vmax.f32 %v103_v8, 0.0 }
  0x97   :  { %v107_v10 = vpack.c.bf16 %v106_v9, %v106_v9 }
  0x99   :  { %207 = vmatmul.msk.bf16.vlgmr.msra.gmra.mxu1 %vm128_vm1, %v107_v10 }
  0x9a   :  { %v104_v11 = vpop.f32.mrf.mxu0 }
 0x116   :  { %v141_v15 = vpop.f32.mrf.mxu1 }
 0x117   :  { %v142_v16 = vadd.f32 %v221_v14, %v141_v15 }
 0x119   :  { %v145_v17 = vmax.f32 %v142_v16, 0.0 }
 0x11b   :  { %v146_v18 = vpack.c.bf16 %v145_v17, %v145_v17 }
 0x11d   :  { %v159_v19 = vsel %vm128_vm1, %v146_v18, 0 }
 0x11e   :  { %v143_v20 = vpop.f32.mrf.mxu1  ;;  %168 = vmatpush.bf16.xpose.msra.mxu2 %v159_v19 }
 0x125   :  { %208 = vmatmul.msk.bf16.vlgmr.msra.gmra.mxu2 %vm128_vm1, %v147_v21 }
 0x1a8   :  { %v170_v24 = vpop.f32.mrf.mxu2 }
 0x1a9   :  { %v171_v25 = vadd.f32 %v170_v24, %v154_v23 }
 0x1ab   :  { %175 = vst.msk [vmem:[#allocation9] sm:$0x1] %vm174_vm2, %v171_v25 }
 0x1ac   :  { %186 = dma.vmem_to_hbm [thread:$0]  %s182_s22, 16, %s184_s24, [#allocation5]  }
 0x1b0   :  { %v172_v26 = vpop.f32.mrf.mxu2 }
 0x1b1   :  { %322 = dma.done.wait [#allocation5], 16  }
 0x1b2   :  { %323 = vsyncadd [#allocation5], 4294967280 }
 0x1b3   :  { %191 = vsyncpa [#allocation4], 1 }
 0x1b4   :  { %192 = vsyncpa [#allocation7], 1 }
 0x1b5   :  { %193 = vsyncpa [#allocation5], 1 }

</bundles_post_ra>
